<compile_context>
chip_gen: v5e
topology: v5e:2x2
jax: 0.10.0
libtpu: 0.0.40
codegen_flags: <defaults>
</compile_context>

<pallas_src>
import math
import functools

import jax
import jax.numpy as jnp
from jax.experimental import pallas as pl
from jax.experimental.pallas import tpu as pltpu


_NEG_BIG = -1e30  # finite "minus infinity" for padded vocab columns


def _round_up(x, m):
    return (x + m - 1) // m * m


def _proj_logsoftmax_kernel(x_ref, w_ref, b_ref, o_ref, m_ref, l_ref):
    """Fused linear + log_softmax, two passes over the vocab axis.

    grid = (M blocks, pass in {0: stats, 1: write}, V blocks)
      x_ref: (tm, D)   compute dtype (bf16)
      w_ref: (D, tn)   compute dtype (bf16)
      b_ref: (1, tn)   f32
      o_ref: (tm, tn)  out dtype
      m_ref, l_ref: (tm, 1) f32 running max / running sum-exp
    """
    p = pl.program_id(1)
    j = pl.program_id(2)

    @pl.when(jnp.logical_and(p == 0, j == 0))
    def _init():
        m_ref[...] = jnp.full_like(m_ref, -jnp.inf)
        l_ref[...] = jnp.zeros_like(l_ref)

    # MXU matmul with f32 accumulation; bias add stays f32.
    logits = jnp.dot(x_ref[...], w_ref[...],
                     preferred_element_type=jnp.float32) + b_ref[...]

    @pl.when(p == 0)
    def _stats():
        m_prev = m_ref[...]
        m_new = jnp.maximum(m_prev, jnp.max(logits, axis=-1, keepdims=True))
        l_ref[...] = (l_ref[...] * jnp.exp(m_prev - m_new)
                      + jnp.sum(jnp.exp(logits - m_new), axis=-1, keepdims=True))
        m_ref[...] = m_new

    @pl.when(p == 1)
    def _write():
        lse = m_ref[...] + jnp.log(l_ref[...])
        o_ref[...] = (logits - lse).astype(o_ref.dtype)


@functools.partial(
    jax.jit,
    static_argnames=("tile_m", "tile_v", "compute_dtype", "out_dtype"))
def projection_layer(x, weight_t, bias, *, tile_m=256, tile_v=512,
                     compute_dtype=jnp.bfloat16, out_dtype=None):
    """log_softmax(x @ weight_t + bias, axis=-1).

    x:        (..., D)
    weight_t: (D, V)  nn.Linear weight pre-transposed (do the transpose once,
                      outside jit, when the parameters are created)
    bias:     (V,)
    """
    lead = x.shape[:-1]
    D = x.shape[-1]
    V = weight_t.shape[1]
    M = math.prod(lead) if lead else 1
    out_dtype = x.dtype if out_dtype is None else out_dtype

    # bf16 MXU operands (f32 accumulation in-kernel) -> ~3x MXU rate and half
    # the streamed HBM bytes for the repeatedly-fetched weight tiles.
    x2d = x.reshape(M, D).astype(compute_dtype)
    w = weight_t.astype(compute_dtype)
    b = bias.astype(jnp.float32).reshape(1, V)

    # Tile sizes: big enough to feed the MXU, clamped for tiny problems.
    tm = min(tile_m, _round_up(M, 16))
    tn = min(tile_v, _round_up(V, 128))
    Mp = _round_up(M, tm)
    Vp = _round_up(V, tn)

    if Mp != M:
        x2d = jnp.pad(x2d, ((0, Mp - M), (0, 0)))
    if Vp != V:
        w = jnp.pad(w, ((0, 0), (0, Vp - V)))
        # Padded vocab columns get a huge negative bias so they contribute ~0
        # to the softmax sum and are sliced away afterwards.
        b = jnp.pad(b, ((0, 0), (0, Vp - V)), constant_values=_NEG_BIG)

    grid = (Mp // tm, 2, Vp // tn)

    out = pl.pallas_call(
        _proj_logsoftmax_kernel,
        out_shape=jax.ShapeDtypeStruct((Mp, Vp), out_dtype),
        grid_spec=pltpu.PrefetchScalarGridSpec(
            num_scalar_prefetch=0,
            grid=grid,
            in_specs=[
                pl.BlockSpec((tm, D), lambda i, p, j: (i, 0)),
                pl.BlockSpec((D, tn), lambda i, p, j: (0, j)),
                pl.BlockSpec((1, tn), lambda i, p, j: (0, j)),
            ],
            # Pass 0 (stats): pin the output block to (i, 0) and never write
            # it, so no garbage writeback. Pass 1 walks (i, j) and emits the
            # final lane-dense (tn % 128 == 0) log-prob blocks.
            out_specs=pl.BlockSpec((tm, tn), lambda i, p, j: (i, j * p)),
            scratch_shapes=[
                pltpu.VMEM((tm, 1), jnp.float32),   # running max
                pltpu.VMEM((tm, 1), jnp.float32),   # running sum-exp
            ],
        ),
        compiler_params=pltpu.CompilerParams(
            # M blocks split across TensorCores (v7x megacore); the pass and
            # vocab axes carry the running-softmax state -> "arbitrary", last.
            dimension_semantics=("parallel", "arbitrary", "arbitrary"),
            vmem_limit_bytes=32 * 1024 * 1024,
        ),
    )(x2d, w, b)

    return out[:M, :V].reshape(*lead, V)


if __name__ == "__main__":
    # Small shapes, chosen so the toy run still exercises V-tiling, vocab
    # padding and both passes.
    batch, seq, d_model, vocab_size = 2, 8, 32, 320

    key = jax.random.PRNGKey(0)
    kx, kw, kb = jax.random.split(key, 3)

    # Mirror nn.Linear default init: U(-1/sqrt(d_model), 1/sqrt(d_model)).
    bound = 1.0 / math.sqrt(d_model)
    weight = jax.random.uniform(kw, (vocab_size, d_model), jnp.float32, -bound, bound)
    bias = jax.random.uniform(kb, (vocab_size,), jnp.float32, -bound, bound)
    x = jax.random.normal(kx, (batch, seq, d_model), jnp.float32)

    # One-time transpose outside jit: the kernel streams the (D, V) layout.
    weight_t = jnp.asarray(weight.T)

    out = projection_layer(x, weight_t, bias, tile_m=16, tile_v=128,
                           out_dtype=jnp.float32)
    jax.block_until_ready(out)

    assert out.shape == (batch, seq, vocab_size)
    assert bool(jnp.all(jnp.isfinite(out)))

    # Tight check: reference with identical bf16 operand rounding.
    xb = x.astype(jnp.bfloat16).astype(jnp.float32)
    wb = weight_t.astype(jnp.bfloat16).astype(jnp.float32)
    ref_bf16 = jax.nn.log_softmax(
        jnp.dot(xb, wb, precision=jax.lax.Precision.HIGHEST) + bias, axis=-1)
    assert bool(jnp.allclose(out, ref_bf16, atol=1e-3, rtol=1e-3))

    # Loose sanity check against the full-f32 torch-module semantics.
    ref_f32 = jax.nn.log_softmax(
        jnp.dot(x, weight_t, precision=jax.lax.Precision.HIGHEST) + bias, axis=-1)
    assert bool(jnp.allclose(out, ref_f32, atol=5e-2, rtol=5e-2))

    print("KERNEL_OK")
</pallas_src>

<mosaic_0001>
module attributes {stable_mosaic.version = 11 : i64} {
  func.func @_proj_logsoftmax_kernel(%arg0: i32, %arg1: i32, %arg2: i32, %arg3: memref<16x32xbf16, #tpu.memory_space<vmem>>, %arg4: memref<32x128xbf16, #tpu.memory_space<vmem>>, %arg5: memref<1x128xf32, #tpu.memory_space<vmem>>, %arg6: memref<16x128xf32, #tpu.memory_space<vmem>>, %arg7: memref<16x1xf32, #tpu.memory_space<vmem>>, %arg8: memref<16x1xf32, #tpu.memory_space<vmem>>) attributes {dimension_semantics = [#tpu.dimension_semantics<parallel>, #tpu.dimension_semantics<arbitrary>, #tpu.dimension_semantics<arbitrary>], iteration_bounds = array<i64: 1, 2, 3>, scalar_prefetch = 0 : i64, scratch_operands = 2 : i64, tpu.core_type = #tpu.core_type<tc>, window_params = [{transform_indices = @transform_0, window_bounds = array<i64: 16, 32>}, {transform_indices = @transform_1, window_bounds = array<i64: 32, 128>}, {transform_indices = @transform_2, window_bounds = array<i64: 1, 128>}, {transform_indices = @transform_3, window_bounds = array<i64: 16, 128>}]} {
    %c0_i32 = arith.constant 0 : i32
    %0 = arith.cmpi eq, %arg1, %c0_i32 : i32
    %c0_i32_0 = arith.constant 0 : i32
    %1 = arith.cmpi eq, %arg2, %c0_i32_0 : i32
    %2 = arith.andi %0, %1 : i1
    %3 = arith.extui %2 : i1 to i32
    %c0_i32_1 = arith.constant 0 : i32
    %4 = arith.cmpi ne, %3, %c0_i32_1 : i32
    scf.if %4 {
      %cst_10 = arith.constant 0xFF800000 : f32
      %17 = vector.broadcast %cst_10 : f32 to vector<16x1xf32>
      %c0_11 = arith.constant 0 : index
      %c0_12 = arith.constant 0 : index
      %18 = vector.load %arg7[%c0_11, %c0_12] : memref<16x1xf32, #tpu.memory_space<vmem>>, vector<16x1xf32>
      tpu.vector_store %arg7[%c0_11, %c0_12], %17 {strides = array<i32>} : memref<16x1xf32, #tpu.memory_space<vmem>>, vector<16x1xf32>,
      %cst_13 = arith.constant 0.000000e+00 : f32
      %19 = vector.broadcast %cst_13 : f32 to vector<16x1xf32>
      %c0_14 = arith.constant 0 : index
      %c0_15 = arith.constant 0 : index
      %20 = vector.load %arg8[%c0_14, %c0_15] : memref<16x1xf32, #tpu.memory_space<vmem>>, vector<16x1xf32>
      tpu.vector_store %arg8[%c0_14, %c0_15], %19 {strides = array<i32>} : memref<16x1xf32, #tpu.memory_space<vmem>>, vector<16x1xf32>,
    } else {
    }
    %c0 = arith.constant 0 : index
    %c0_2 = arith.constant 0 : index
    %5 = vector.load %arg3[%c0, %c0_2] : memref<16x32xbf16, #tpu.memory_space<vmem>>, vector<16x32xbf16>
    %c0_3 = arith.constant 0 : index
    %c0_4 = arith.constant 0 : index
    %6 = vector.load %arg4[%c0_3, %c0_4] : memref<32x128xbf16, #tpu.memory_space<vmem>>, vector<32x128xbf16>
    %cst = arith.constant dense<0.000000e+00> : vector<16x128xf32>
    %7 = tpu.matmul %5, %6, %cst {dimension_numbers = #tpu.dot_dimension_numbers<[1], [0], [0], [1], [0, 0, 1, 1], [], []>} : vector<16x32xbf16>, vector<32x128xbf16>, vector<16x128xf32> -> vector<16x128xf32>
    %c0_5 = arith.constant 0 : index
    %c0_6 = arith.constant 0 : index
    %8 = vector.load %arg5[%c0_5, %c0_6] : memref<1x128xf32, #tpu.memory_space<vmem>>, vector<1x128xf32>
    %9 = vector.broadcast %8 : vector<1x128xf32> to vector<16x128xf32>
    %10 = arith.addf %7, %9 : vector<16x128xf32>
    %c0_i32_7 = arith.constant 0 : i32
    %11 = arith.cmpi eq, %arg1, %c0_i32_7 : i32
    %12 = arith.extui %11 : i1 to i32
    %c0_i32_8 = arith.constant 0 : i32
    %13 = arith.cmpi ne, %12, %c0_i32_8 : i32
    scf.if %13 {
      %c0_10 = arith.constant 0 : index
      %c0_11 = arith.constant 0 : index
      %17 = vector.load %arg7[%c0_10, %c0_11] : memref<16x1xf32, #tpu.memory_space<vmem>>, vector<16x1xf32>
      %cst_12 = arith.constant dense<0xFF800000> : vector<16xf32>
      %18 = vector.multi_reduction <maximumf>, %10, %cst_12 [1] : vector<16x128xf32> to vector<16xf32>
      %19 = vector.shape_cast %18 : vector<16xf32> to vector<16x1xf32>
      %20 = arith.maximumf %17, %19 : vector<16x1xf32>
      %c0_13 = arith.constant 0 : index
      %c0_14 = arith.constant 0 : index
      %21 = vector.load %arg8[%c0_13, %c0_14] : memref<16x1xf32, #tpu.memory_space<vmem>>, vector<16x1xf32>
      %22 = arith.subf %17, %20 : vector<16x1xf32>
      %23 = math.exp %22 : vector<16x1xf32>
      %24 = arith.mulf %21, %23 : vector<16x1xf32>
      %25 = vector.broadcast %20 : vector<16x1xf32> to vector<16x128xf32>
      %26 = arith.subf %10, %25 : vector<16x128xf32>
      %27 = math.exp %26 : vector<16x128xf32>
      %cst_15 = arith.constant dense<0.000000e+00> : vector<16xf32>
      %28 = vector.multi_reduction <add>, %27, %cst_15 [1] : vector<16x128xf32> to vector<16xf32>
      %29 = vector.shape_cast %28 : vector<16xf32> to vector<16x1xf32>
      %30 = arith.addf %24, %29 : vector<16x1xf32>
      %c0_16 = arith.constant 0 : index
      %c0_17 = arith.constant 0 : index
      %31 = vector.load %arg8[%c0_16, %c0_17] : memref<16x1xf32, #tpu.memory_space<vmem>>, vector<16x1xf32>
      tpu.vector_store %arg8[%c0_16, %c0_17], %30 {strides = array<i32>} : memref<16x1xf32, #tpu.memory_space<vmem>>, vector<16x1xf32>,
      %c0_18 = arith.constant 0 : index
      %c0_19 = arith.constant 0 : index
      %32 = vector.load %arg7[%c0_18, %c0_19] : memref<16x1xf32, #tpu.memory_space<vmem>>, vector<16x1xf32>
      tpu.vector_store %arg7[%c0_18, %c0_19], %20 {strides = array<i32>} : memref<16x1xf32, #tpu.memory_space<vmem>>, vector<16x1xf32>,
    } else {
    }
    %c1_i32 = arith.constant 1 : i32
    %14 = arith.cmpi eq, %arg1, %c1_i32 : i32
    %15 = arith.extui %14 : i1 to i32
    %c0_i32_9 = arith.constant 0 : i32
    %16 = arith.cmpi ne, %15, %c0_i32_9 : i32
    scf.if %16 {
      %c0_10 = arith.constant 0 : index
      %c0_11 = arith.constant 0 : index
      %17 = vector.load %arg7[%c0_10, %c0_11] : memref<16x1xf32, #tpu.memory_space<vmem>>, vector<16x1xf32>
      %c0_12 = arith.constant 0 : index
      %c0_13 = arith.constant 0 : index
      %18 = vector.load %arg8[%c0_12, %c0_13] : memref<16x1xf32, #tpu.memory_space<vmem>>, vector<16x1xf32>
      %19 = math.log %18 : vector<16x1xf32>
      %20 = arith.addf %17, %19 : vector<16x1xf32>
      %21 = vector.broadcast %20 : vector<16x1xf32> to vector<16x128xf32>
      %22 = arith.subf %10, %21 : vector<16x128xf32>
      %c0_14 = arith.constant 0 : index
      %c0_15 = arith.constant 0 : index
      %23 = vector.load %arg6[%c0_14, %c0_15] : memref<16x128xf32, #tpu.memory_space<vmem>>, vector<16x128xf32>
      tpu.vector_store %arg6[%c0_14, %c0_15], %22 {strides = array<i32>} : memref<16x128xf32, #tpu.memory_space<vmem>>, vector<16x128xf32>,
    } else {
    }
    return
  }
  func.func @transform_0(%arg0: i32, %arg1: i32, %arg2: i32) -> (i32, i32) {
    %c0_i32 = arith.constant 0 : i32
    %c0_i32_0 = arith.constant 0 : i32
    return %arg0, %c0_i32 : i32, i32
  }
  func.func @transform_1(%arg0: i32, %arg1: i32, %arg2: i32) -> (i32, i32) {
    %c0_i32 = arith.constant 0 : i32
    %c0_i32_0 = arith.constant 0 : i32
    return %c0_i32, %arg2 : i32, i32
  }
  func.func @transform_2(%arg0: i32, %arg1: i32, %arg2: i32) -> (i32, i32) {
    %c0_i32 = arith.constant 0 : i32
    %c0_i32_0 = arith.constant 0 : i32
    return %c0_i32, %arg2 : i32, i32
  }
  func.func @transform_3(%arg0: i32, %arg1: i32, %arg2: i32) -> (i32, i32) {
    %0 = arith.muli %arg2, %arg1 : i32
    %c0_i32 = arith.constant 0 : i32
    return %arg0, %0 : i32, i32
  }
}

</mosaic_0001>

<bundles_post_ra>
// kernel: projection_layer.1
= control target key start
LH: loop header
LB: loop body
LE: loop exit
PB: predicated region body
PF: predicated region fallthrough
CT: control target
= control target key end

     0   :  { %s781_s12 = smov 0   ;;  %s783_s13 = smov 0   ;;  %s939_s0 = inlined_call_operand.vmem [shape: bf16[16,32], index: 0, kind: input, shape index: {}]   ;;  %s940_s1 = inlined_call_operand.vmem [shape: bf16[32,384], index: 1, kind: input, shape index: {}]   ;;  %s941_s2 = inlined_call_operand.vmem [shape: f32[1,384], index: 2, kind: input, shape index: {}]   ;;  %s942_s3 = inlined_call_operand.vmem [shape: f32[16,384], index: 3, kind: output, shape index: {}]  }
   0x1   :  { %s785_s14 = smov 0   ;;  %s787_s15 = smov 0  }
   0x2   :  { %s789_s16 = smov 0   ;;  %s791_s17 = smov 0  }
   0x3   :  { %s793_s18 = smov 0   ;;  %s795_s19 = smov 0  }
   0x4   :  { %s797_s20 = smov 0  }
   0x5 LB: > { %s561_s21 = sadd.s32 4294967295, %s755_s20   ;;  %s25_s22 = sadd.s32 1, %s747_s18  ;;  %s755_s20 = sphi %s797_s20, %s13_s20   ;;  %s751_s19 = sphi %s795_s19, %s952_s19   ;;  %s747_s18 = sphi %s793_s18, %s951_s18   ;;  %s743_s17 = sphi %s791_s17, %s950_s17   ;;  %s739_s16 = sphi %s789_s16, %s949_s16   ;;  %s735_s15 = sphi %s787_s15, %s948_s15   ;;  %s731_s14 = sphi %s785_s14, %s947_s14   ;;  %s727_s13 = sphi %s783_s13, %s946_s13   ;;  %s723_s12 = sphi %s781_s12, %s945_s12  }
   0x6   : > { %p26_p0 = scmp.ge.s32.totalorder %s25_s22, 3  ;;  %s28_s23 = sadd.s32 1, %s751_s19 }
   0x7   : > { %s65_s24 = sadd.s32 1, %s735_s15  ;;  %p72_p1 = scmp.ne.s32.totalorder %s735_s15, %s731_s14 }
   0x8   : > { %s954_s22 = smov (%p26_p0, %s25_s22), 0  ;;  %s956_s23 = smov (!%p26_p0, %s28_s23), %s751_s19 }
   0x9   : > { %s62_s25 = ssub.s32 %s747_s18, %s954_s22  ;;  %p73_p2 = scmp.eq.s32.totalorder %s755_s20, 0 }
   0xa   : > { %p30_p3 = scmp.ge.s32.totalorder %s956_s23, 2  ;;  %p63_p4 = scmp.eq.s32.totalorder %s62_s25, 0 }
   0xb   : > { %p838_p5 = por %p73_p2, %p72_p1  ;;  %s114_s27 = smul.u32 %s747_s18, %s751_s19 }
   0xc   : > { %s958_s23 = smov (%p30_p3, %s956_s23), 0  ;;  %p131_p6 = scmp.ne.s32.totalorder %s727_s13, %s723_s12 }
   0xd   : > { %s847_s28 = scalar_select %p63_p4, %s735_s15, %s65_s24  }
   0xe   : > { %s115_s29 = smul.u32 %s958_s23, %s954_s22  ;;  %p132_p7 = scmp.eq.s32.totalorder %s561_s21, 5 }
   0xf   : > { %s121_s4 = sadd.s32 1, %s727_s13  ;;  %p565_p10 = scmp.ge.s32.totalorder %s755_s20, 6 }
  0x10   : > { %s117_s30 = ssub.s32 %s114_s27, %s115_s29  ;;  %p854_p9 = por %p132_p7, %p131_p6 }
  0x11   : > { %p119_p8 = scmp.eq.s32.totalorder %s117_s30, 0  ;;  %163 = sbr.rel (%p565_p10) target bundleno = 30 (0x1e), region = 20 }
  0x13   : > { %s859_s6 = scalar_select %p119_p8, %s727_s13, %s121_s4  }
  0x16   : > { %166 = sbr.rel (!%p838_p5) target bundleno = 30 (0x1e), region = 24  ;;  %s168_s7 = sand.u32 (%p838_p5), 1, %s735_s15  }
  0x17   : > { %s567_s8 = sshll.u32 (%p838_p5), %s747_s18, 2  ;;  %s566_s9 = sshll.u32 (%p838_p5), %s168_s7, 4 }
  0x18   : > { %s172_s21 = scalar_lea.vmem (%p838_p5), %s940_s1, %s567_s8  ;;  %s170_s24 = scalar_lea.vmem (%p838_p5), [#allocation4], %s566_s9 }
  0x19   : > { %v189_v0 = vld [vmem:[%s172_s21] sm:$0xf] (%p838_p5)  ;;  %v191_v1 = vld [vmem:[%s172_s21 + $0xc] sm:$0xf] (%p838_p5)  ;;  %v193_v2 = vld [vmem:[%s172_s21 + $0x18] sm:$0xf] (%p838_p5) }
  0x1a   : > { %190 = vst [vmem:[%s170_s24] sm:$0xf] (%p838_p5), %v189_v0  ;;  %v195_v3 = vld [vmem:[%s172_s21 + $0x24] sm:$0xf] (%p838_p5) }
  0x1b   : > { %192 = vst [vmem:[%s170_s24 + $0x4] sm:$0xf] %v191_v1 }
  0x1c   : > { %194 = vst [vmem:[%s170_s24 + $0x8] sm:$0xf] %v193_v2 }
  0x1d   : > { %196 = vst [vmem:[%s170_s24 + $0xc] sm:$0xf] %v195_v3 }
  0x1e PF: > { %p568_p11 = scmp.ge.s32.totalorder %s755_s20, 1  ;;  %p233_p12 = scmp.lt.s32.totalorder %s755_s20, 7 }
  0x20   : > { %p234_p13 = pnand %p568_p11, %p233_p12 }
  0x21   : > { %s240_s25 = sand.u32 (!%p234_p13), 1, %s731_s14   ;;  %s267_s26 = sand.u32 (!%p234_p13), 1, %s723_s12  }
  0x22   : > { %237 = sbr.rel (%p234_p13) target bundleno = 717 (0x2cd), region = 69  ;;  %s569_s27 = sshll.u32 (!%p234_p13), %s240_s25, 4 }
  0x23   : > { %s570_s29 = sshll.u32 (!%p234_p13), %s267_s26, 4  ;;  %p276_p0 = scmp.lt.s32.totalorder (!%p234_p13), %s739_s16, 2 }
  0x24   : > { %p282_p1 = scmp.eq.s32.totalorder (!%p234_p13), %s743_s17, 0  ;;  %p283_p2 = scmp.eq.s32.totalorder (!%p234_p13), %s739_s16, 0 }
  0x25   : > { %s242_s9 = scalar_lea.vmem (!%p234_p13), [#allocation4], %s569_s27  ;;  %s880_s10 = scalar_lea.vmem (!%p234_p13), [#allocation5], %s570_s29 }
  0x26   : > { %p284_p3 = pnand (!%p234_p13), %p283_p2, %p282_p1 }
  0x27   : > { %s277_s30 = scalar_select %p276_p0, %s739_s16, 2 }
  0x28   : > { %287 = sbr.rel (%p284_p3) target bundleno = 50 (0x32), region = 77 }
  0x29   : > { %s278_s8 = scalar_lea.vmem %s941_s2, %s277_s30 }
  0x2d   : > { %vm288_vm0 = vcmask 7168   ;;  %v757_v4 = vmov -inf   ;;  %v758_v5 = vmov 0.0  }
  0x2e   : > { %289 = vst.msk [vmem:[#allocation2] sm:$0xff] %vm288_vm0, %v757_v4 }
  0x2f   : > { %290 = vst.msk [vmem:[#allocation2 + $0x8] sm:$0xff] %vm288_vm0, %v757_v4 }
  0x30   : > { %291 = vst.msk [vmem:[#allocation3] sm:$0xff] %vm288_vm0, %v758_v5 }
  0x31   : > { %292 = vst.msk [vmem:[#allocation3 + $0x8] sm:$0xff] %vm288_vm0, %v758_v5 }
  0x32 PF: > { %v592_v6 = vld [vmem:[%s242_s9 + $0x8] sm:$0xff]  ;;  %v591_v7 = vld [vmem:[%s242_s9] sm:$0xff]  ;;  %vm320_vm1 = vcmask 261120   ;;  %p584_p4 = scmp.ne.s32.totalorder %s743_s17, 0 }
  0x33   : > { %330 = vmatpush.bf16.msra.mxu0 %v592_v6  ;;  %v590_v8 = vld [vmem:[%s939_s0] sm:$0xff] }
  0x34   : > { %v669_v9 = vld [vmem:[%s278_s8] ss:$0 sm:$0xff] }
  0x37   : > { %331 = vmatpush.bf16.msra.mxu0 %v591_v7 }
  0x3a   : > { %583 = vmatmul.msk.bf16.vlgmr.msra.gmra.mxu0 %vm320_vm1, %v590_v8 }
  0xb7   : > { %v333_v10 = vpop.f32.mrf.mxu0 }
  0xb8   : > { %v885_v11 = vadd.f32 %v669_v9, %v333_v10 }
  0xbc   : > { %340 = sbr.rel (%p584_p4) target bundleno = 564 (0x234), region = 81 }
  0xbf   : > { %v335_v12 = vpop.f32.mrf.mxu0 }
  0xc0   : > { %v887_v13 = vadd.f32 %v669_v9, %v335_v12 }
  0xc1   : > { %343 = vmax.xlane.f32.xlu0 %v885_v11  ;;  %v759_v14 = vmov 0   ;;  %v341_v15 = vld [vmem:[#allocation2] sm:$0xff]  ;;  %vm381_vm2 = vcmask 7168   ;;  %v342_v19 = vld [vmem:[#allocation2 + $0x8] sm:$0xff]  ;;  %v349_v34 = vld [vmem:[#allocation3] sm:$0xff] }
  0xc2   : > { %670 = vset.pattern.permute.xlu1 %v759_v14  ;;  %671 = vset.pattern.permute.xlu0 %v759_v14  ;;  %v350_v39 = vld [vmem:[#allocation3 + $0x8] sm:$0xff] }
  0xc9   : > { %345 = vmax.xlane.f32.xlu0 %v887_v13 }
 0x134   : > { %v344_v16 = vpop.xlane.xlu0 %343 }
 0x135   : > { %v347_v17 = vmax.f32 %v341_v15, %v344_v16 }
 0x137   : > { %v351_v18 = vsub.f32 %v341_v15, %v347_v17  ;;  %384 = vst.msk [vmem:[#allocation2] sm:$0xff] %vm381_vm2, %v347_v17  ;;  %361 = vperm.xlu1 %670, %v347_v17  }
 0x139   : > { %v353_v31 = vmul.f32 1.442695, %v351_v18 }
 0x13c   : > { %v346_v20 = vpop.xlane.xlu0 %345 }
 0x13d   : > { %v348_v21 = vmax.f32 %v342_v19, %v346_v20 }
 0x13f   : > { %v352_v22 = vsub.f32 %v342_v19, %v348_v21  ;;  %385 = vst.msk [vmem:[#allocation2 + $0x8] sm:$0xff] %vm381_vm2, %v348_v21  ;;  %366 = vperm.xlu1 %670, %v348_v21  }
 0x141   : > { %v355_v32 = vmul.f32 1.442695, %v352_v22 }
 0x1a9   : > { %v362_v23 = vpop.permute.xlu1 %361 }
 0x1aa   : > { %v369_v24 = vsub.f32 %v885_v11, %v362_v23 }
 0x1ac   : > { %v371_v25 = vmul.f32 1.442695, %v369_v24 }
 0x1ae   : > { %672 = vpow2.f32 %v371_v25 }
 0x1b1   : > { %v367_v26 = vpop.permute.xlu1 %366 }
 0x1b2   : > { %v370_v27 = vsub.f32 %v887_v13, %v367_v26 }
 0x1b4   : > { %v673_v28 = vpop.eup %672  ;;  %v373_v29 = vmul.f32 1.442695, %v370_v27 }
 0x1b5   : > { %375 = vadd.xlane.f32.xlu2 %v673_v28 }
 0x1b6   : > { %674 = vpow2.f32 %v373_v29 }
 0x1b7   : > { %676 = vpow2.f32 %v353_v31 }
 0x1b8   : > { %678 = vpow2.f32 %v355_v32 }
 0x1bc   : > { %v675_v30 = vpop.eup %674 }
 0x1bd   : > { %377 = vadd.xlane.f32.xlu2 %v675_v30  ;;  %v677_v33 = vpop.eup %676 }
 0x1be   : > { %v357_v35 = vmul.f32 %v677_v33, %v349_v34  ;;  %v679_v38 = vpop.eup %678 }
 0x1bf   : > { %v358_v40 = vmul.f32 %v679_v38, %v350_v39 }
 0x228   : > { %v376_v36 = vpop.xlane.xlu2 %375 }
 0x229   : > { %v379_v37 = vadd.f32 %v376_v36, %v357_v35 }
 0x22b   : > { %382 = vst.msk [vmem:[#allocation3] sm:$0xff] %vm381_vm2, %v379_v37 }
 0x230   : > { %v378_v41 = vpop.xlane.xlu2 %377 }
 0x231   : > { %v380_v42 = vadd.f32 %v378_v41, %v358_v40 }
 0x233   : > { %383 = vst.msk [vmem:[#allocation3 + $0x8] sm:$0xff] %vm381_vm2, %v380_v42 }
 0x234 PF: > { %p585_p5 = scmp.ne.s32.totalorder %s743_s17, 1 }
 0x236   : > { %389 = sbr.rel (%p585_p5) target bundleno = 709 (0x2c5), region = 85 }
 0x23b   : > { %v392_v43 = vld [vmem:[#allocation3] sm:$0xff]  ;;  %v760_v44 = vmov 0   ;;  %v393_v45 = vld [vmem:[#allocation3 + $0x8] sm:$0xff]  ;;  %v390_v47 = vld [vmem:[#allocation2] sm:$0xff] }
 0x23c   : > { %680 = vset.pattern.permute.xlu0 %v760_v44  ;;  %681 = vlog2.f32 %v392_v43  ;;  %v391_v52 = vld [vmem:[#allocation2 + $0x8] sm:$0xff] }
 0x23d   : > { %683 = vlog2.f32 %v393_v45 }
 0x242   : > { %v682_v46 = vpop.eup %681 }
 0x243   : > { %v395_v48 = vmul.f32 0.6931472, %v682_v46  ;;  %v684_v49 = vpop.eup %683 }
 0x244   : > { %v397_v51 = vmul.f32 0.6931472, %v684_v49 }
 0x245   : > { %v398_v50 = vadd.f32 %v395_v48, %v390_v47 }
 0x246   : > { %v399_v53 = vadd.f32 %v397_v51, %v391_v52 }
 0x247   : > { %402 = vperm.xlu0 %680, %v398_v50  }
 0x24f   : > { %407 = vperm.xlu0 %680, %v399_v53  }
 0x2b9   : > { %v403_v54 = vpop.permute.xlu0 %402 }
 0x2ba   : > { %v410_v55 = vsub.f32 %v885_v11, %v403_v54 }
 0x2bc   : > { %412 = vst [vmem:[%s880_s10] sm:$0xff] %v410_v55 }
 0x2c1   : > { %v408_v56 = vpop.permute.xlu0 %407 }
 0x2c2   : > { %v411_v57 = vsub.f32 %v887_v13, %v408_v56 }
 0x2c4   : > { %413 = vst [vmem:[%s880_s10 + $0x8] sm:$0xff] %v411_v57 }
 0x2c5 PF: > { %420 = sbr.rel (!%p854_p9) target bundleno = 717 (0x2cd), region = 89  ;;  %v457_v58 = vld [vmem:[%s880_s10] sm:$0xff] (%p854_p9) }
 0x2c6   : > { %s421_s11 = smul.u32 (%p854_p9), %s739_s16, %s743_s17 }
 0x2c8   : > { %s587_s21 = sshll.u32 (%p854_p9), %s421_s11, 3 }
 0x2c9   : > { %s426_s26 = scalar_lea.vmem (%p854_p9), %s942_s3, %s587_s21 }
 0x2ca   : > { %458 = vst [vmem:[%s426_s26] sm:$0xff] %v457_v58 }
 0x2cb   : > { %v459_v59 = vld [vmem:[%s880_s10 + $0x8] sm:$0xff] }
 0x2cc   : > { %460 = vst [vmem:[%s426_s26 + $0x18] sm:$0xff] %v459_v59 }
 0x2cd PF: > { %s13_s20 = sadd.s32 1, %s755_s20   ;;  %s945_s12 = smov %s727_s13 }
 0x2ce   : > { %p10_p6 = scmp.ge.s32.totalorder %s13_s20, 8   ;;  %s946_s13 = smov %s859_s6 }
 0x2cf   : > { %s947_s14 = smov %s735_s15  ;;  %s948_s15 = smov %s847_s28 }
 0x2d0   : > { %s949_s16 = smov %s747_s18  ;;  %s950_s17 = smov %s751_s19 }
 0x2d1   : > { %s951_s18 = smov %s954_s22  ;;  %s952_s19 = smov %s958_s23 }
 0x2d2   :  { %12 = sbr.rel (!%p10_p6) target bundleno = 5 (0x5), region = 164 }

</bundles_post_ra>
